<compile_context>
chip_gen: v6e
topology: v6e:2x2x1
jax: 0.10.0
libtpu: 0.0.40
codegen_flags: <defaults>
</compile_context>

<pallas_src>
import functools

import jax
import jax.numpy as jnp
from jax.experimental import pallas as pl
from jax.experimental.pallas import tpu as pltpu

_LANE = 128
_SUBLANE = 8


def _round_up(x, m):
    return ((x + m - 1) // m) * m


def _mlp_kernel(x_ref,
                w1_ref, a1_ref,
                w2_ref, a2_ref,
                w3_ref, a3_ref,
                w4_ref, b4_ref,
                o_ref):
    """Fused 4-layer MLP forward on one (TB, Dp) batch tile.

    a*_ref are fp32 (2, H): row 0 = per-feature scale, row 1 = per-feature shift
    (Linear bias + BatchNorm eval-mode affine folded in).
    Weights are bf16 (in_features, out_features); matmuls accumulate in fp32.
    """
    # Hoist the per-feature affine reads once.
    s1, t1 = a1_ref[0:1, :], a1_ref[1:2, :]
    s2, t2 = a2_ref[0:1, :], a2_ref[1:2, :]
    s3, t3 = a3_ref[0:1, :], a3_ref[1:2, :]

    x = x_ref[...]  # bf16 (TB, Dp)

    # Layer 1: Linear + BN + ReLU   (Dropout = identity in eval)
    z1 = jnp.dot(x, w1_ref[...], preferred_element_type=jnp.float32)
    h1 = jnp.maximum(z1 * s1 + t1, 0.0).astype(jnp.bfloat16)

    # Layer 2: Linear + BN + ReLU
    z2 = jnp.dot(h1, w2_ref[...], preferred_element_type=jnp.float32)
    h2 = jnp.maximum(z2 * s2 + t2, 0.0).astype(jnp.bfloat16)

    # Layer 3: Linear + BN + ReLU
    z3 = jnp.dot(h2, w3_ref[...], preferred_element_type=jnp.float32)
    h3 = jnp.maximum(z3 * s3 + t3, 0.0).astype(jnp.bfloat16)

    # Layer 4: Linear -> logits (lane-padded to 128 classes)
    z4 = jnp.dot(h3, w4_ref[...], preferred_element_type=jnp.float32)
    o_ref[...] = z4 + b4_ref[...]


def _fold_bn(bias, gamma, beta, running_mean, running_var, eps=1e-5):
    """Fold Linear bias + BatchNorm1d (eval) into per-feature scale/shift (fp32)."""
    inv_std = 1.0 / jnp.sqrt(running_var + eps)
    scale = gamma * inv_std                                  # (H,)
    shift = (bias - running_mean) * scale + beta             # (H,)
    return jnp.stack([scale, shift], axis=0)                 # (2, H) fp32


@functools.partial(jax.jit, static_argnames=("num_classes",))
def mlp_forward(x, params, num_classes):
    (w1, a1, w2, a2, w3, a3, w4, b4) = params
    B, D = x.shape
    Dp = w1.shape[0]          # padded input-feature dim (multiple of 128)
    Cp = w4.shape[1]          # padded class dim (multiple of 128)
    H1, H2, H3 = w1.shape[1], w2.shape[1], w3.shape[1]

    # bf16 activations for the MXU; pad feature dim to lane width.
    xb = x.astype(jnp.bfloat16)
    if Dp > D:
        xb = jnp.pad(xb, ((0, 0), (0, Dp - D)))

    # Batch tile: 256 rows fills the MXU M dim on v6e/v7x; for small batches
    # just round up to a sublane multiple so we don't pad wastefully.
    TB = min(256, _round_up(B, _SUBLANE))
    Bp = _round_up(B, TB)
    if Bp > B:
        xb = jnp.pad(xb, ((0, Bp - B), (0, 0)))

    grid = (Bp // TB,)

    flops = 2 * Bp * (Dp * H1 + H1 * H2 + H2 * H3 + H3 * Cp)
    bytes_accessed = (
        xb.size * xb.dtype.itemsize
        + sum(int(p.size) * p.dtype.itemsize for p in params)
        + Bp * Cp * 4
    )

    def _resident(shape):
        # Whole array, same block every grid step -> stays VMEM-resident.
        return pl.BlockSpec(shape, lambda i: (0, 0))

    out = pl.pallas_call(
        _mlp_kernel,
        out_shape=jax.ShapeDtypeStruct((Bp, Cp), jnp.float32),
        grid=grid,
        in_specs=[
            pl.BlockSpec((TB, Dp), lambda i: (i, 0)),   # x tile, pipelined
            _resident(w1.shape), _resident(a1.shape),
            _resident(w2.shape), _resident(a2.shape),
            _resident(w3.shape), _resident(a3.shape),
            _resident(w4.shape), _resident(b4.shape),
        ],
        out_specs=pl.BlockSpec((TB, Cp), lambda i: (i, 0)),
        compiler_params=pltpu.CompilerParams(
            dimension_semantics=("parallel",)),
        cost_estimate=pl.CostEstimate(
            flops=flops, transcendentals=0, bytes_accessed=bytes_accessed),
    )(xb, w1, a1, w2, a2, w3, a3, w4, b4)

    return out[:B, :num_classes]


def make_params(key, input_dim, num_classes):
    """Deterministic synthetic parameters matching MLPClassifier.__init__ shapes.

    Weights are (in, out) bf16 (PyTorch stores (out, in); transposed at setup).
    Layer-1 input dim is zero-padded to a multiple of 128; the final layer's
    output dim is zero-padded to a multiple of 128 for lane-dense stores.
    """
    Dp = _round_up(input_dim, _LANE)
    Cp = _round_up(num_classes, _LANE)
    dims = [(input_dim, 512), (512, 256), (256, 128), (128, num_classes)]
    keys = jax.random.split(key, 16)
    ki = iter(range(16))

    params = []
    for li, (din, dout) in enumerate(dims):
        w = jax.random.normal(keys[next(ki)], (din, dout), jnp.float32) * 0.05
        b = jax.random.normal(keys[next(ki)], (dout,), jnp.float32) * 0.05
        if li < 3:
            gamma = 1.0 + 0.1 * jax.random.normal(keys[next(ki)], (dout,), jnp.float32)
            beta = 0.1 * jax.random.normal(keys[next(ki)], (dout,), jnp.float32)
            rmean = 0.05 * jnp.arange(dout, dtype=jnp.float32) / dout
            rvar = 1.0 + 0.5 * (jnp.arange(dout, dtype=jnp.float32) / dout)
            a = _fold_bn(b, gamma, beta, rmean, rvar)        # fp32 (2, dout)
            if li == 0 and Dp > din:
                w = jnp.pad(w, ((0, Dp - din), (0, 0)))      # zero rows: no-op
            params.extend([w.astype(jnp.bfloat16), a])
        else:
            if Cp > dout:
                w = jnp.pad(w, ((0, 0), (0, Cp - dout)))
                b = jnp.pad(b, ((0, Cp - dout),))
            params.extend([w.astype(jnp.bfloat16),
                           b.reshape(1, Cp).astype(jnp.float32)])
    return tuple(params)


def reference_forward(x, params, num_classes):
    """Pure-JAX reference of the same eval-mode forward (bf16 operands, f32 acc)."""
    (w1, a1, w2, a2, w3, a3, w4, b4) = params
    Dp = w1.shape[0]

    def mm(h, w):
        return jnp.dot(h.astype(jnp.bfloat16).astype(jnp.float32),
                       w.astype(jnp.float32),
                       preferred_element_type=jnp.float32)

    xb = x
    if Dp > x.shape[1]:
        xb = jnp.pad(xb, ((0, 0), (0, Dp - x.shape[1])))
    h = jnp.maximum(mm(xb, w1) * a1[0] + a1[1], 0.0)
    h = jnp.maximum(mm(h, w2) * a2[0] + a2[1], 0.0)
    h = jnp.maximum(mm(h, w3) * a3[0] + a3[1], 0.0)
    out = mm(h, w4) + b4
    return out[:, :num_classes]


if __name__ == "__main__":
    key = jax.random.PRNGKey(0)
    k_param, k_x = jax.random.split(key)

    batch = 8
    input_dim = 32
    num_classes = 10

    params = make_params(k_param, input_dim, num_classes)
    x = jax.random.normal(k_x, (batch, input_dim), jnp.float32)

    out = mlp_forward(x, params, num_classes=num_classes)
    out = jax.block_until_ready(out)

    ref = reference_forward(x, params, num_classes)
    assert out.shape == (batch, num_classes)
    assert jnp.allclose(out, ref, atol=1e-2, rtol=1e-2), "mismatch vs reference"

    print("KERNEL_OK")
</pallas_src>

<mosaic_0001>
module attributes {stable_mosaic.version = 11 : i64} {
  func.func @_mlp_kernel(%arg0: i32, %arg1: memref<8x128xbf16, #tpu.memory_space<vmem>>, %arg2: memref<128x512xbf16, #tpu.memory_space<vmem>>, %arg3: memref<2x512xf32, #tpu.memory_space<vmem>>, %arg4: memref<512x256xbf16, #tpu.memory_space<vmem>>, %arg5: memref<2x256xf32, #tpu.memory_space<vmem>>, %arg6: memref<256x128xbf16, #tpu.memory_space<vmem>>, %arg7: memref<2x128xf32, #tpu.memory_space<vmem>>, %arg8: memref<128x128xbf16, #tpu.memory_space<vmem>>, %arg9: memref<1x128xf32, #tpu.memory_space<vmem>>, %arg10: memref<8x128xf32, #tpu.memory_space<vmem>>) attributes {dimension_semantics = [#tpu.dimension_semantics<parallel>], iteration_bounds = array<i64: 1>, scalar_prefetch = 0 : i64, scratch_operands = 0 : i64, tpu.core_type = #tpu.core_type<tc>, window_params = [{transform_indices = @transform_0, window_bounds = array<i64: 8, 128>}, {pipeline_mode = #tpu.pipeline_mode<synchronous>, transform_indices = @transform_1, window_bounds = array<i64: 128, 512>}, {pipeline_mode = #tpu.pipeline_mode<synchronous>, transform_indices = @transform_2, window_bounds = array<i64: 2, 512>}, {pipeline_mode = #tpu.pipeline_mode<synchronous>, transform_indices = @transform_3, window_bounds = array<i64: 512, 256>}, {pipeline_mode = #tpu.pipeline_mode<synchronous>, transform_indices = @transform_4, window_bounds = array<i64: 2, 256>}, {pipeline_mode = #tpu.pipeline_mode<synchronous>, transform_indices = @transform_5, window_bounds = array<i64: 256, 128>}, {pipeline_mode = #tpu.pipeline_mode<synchronous>, transform_indices = @transform_6, window_bounds = array<i64: 2, 128>}, {pipeline_mode = #tpu.pipeline_mode<synchronous>, transform_indices = @transform_7, window_bounds = array<i64: 128, 128>}, {pipeline_mode = #tpu.pipeline_mode<synchronous>, transform_indices = @transform_8, window_bounds = array<i64: 1, 128>}, {transform_indices = @transform_9, window_bounds = array<i64: 8, 128>}]} {
    %c0 = arith.constant 0 : index
    %c0_0 = arith.constant 0 : index
    %0 = vector.load %arg3[%c0, %c0_0] : memref<2x512xf32, #tpu.memory_space<vmem>>, vector<1x512xf32>
    %c1 = arith.constant 1 : index
    %c0_1 = arith.constant 0 : index
    %1 = vector.load %arg3[%c1, %c0_1] : memref<2x512xf32, #tpu.memory_space<vmem>>, vector<1x512xf32>
    %c0_2 = arith.constant 0 : index
    %c0_3 = arith.constant 0 : index
    %2 = vector.load %arg5[%c0_2, %c0_3] : memref<2x256xf32, #tpu.memory_space<vmem>>, vector<1x256xf32>
    %c1_4 = arith.constant 1 : index
    %c0_5 = arith.constant 0 : index
    %3 = vector.load %arg5[%c1_4, %c0_5] : memref<2x256xf32, #tpu.memory_space<vmem>>, vector<1x256xf32>
    %c0_6 = arith.constant 0 : index
    %c0_7 = arith.constant 0 : index
    %4 = vector.load %arg7[%c0_6, %c0_7] : memref<2x128xf32, #tpu.memory_space<vmem>>, vector<1x128xf32>
    %c1_8 = arith.constant 1 : index
    %c0_9 = arith.constant 0 : index
    %5 = vector.load %arg7[%c1_8, %c0_9] : memref<2x128xf32, #tpu.memory_space<vmem>>, vector<1x128xf32>
    %c0_10 = arith.constant 0 : index
    %c0_11 = arith.constant 0 : index
    %6 = vector.load %arg1[%c0_10, %c0_11] : memref<8x128xbf16, #tpu.memory_space<vmem>>, vector<8x128xbf16>
    %c0_12 = arith.constant 0 : index
    %c0_13 = arith.constant 0 : index
    %7 = vector.load %arg2[%c0_12, %c0_13] : memref<128x512xbf16, #tpu.memory_space<vmem>>, vector<128x512xbf16>
    %cst = arith.constant dense<0.000000e+00> : vector<8x512xf32>
    %8 = tpu.matmul %6, %7, %cst {dimension_numbers = #tpu.dot_dimension_numbers<[1], [0], [0], [1], [0, 0, 1, 1], [], []>} : vector<8x128xbf16>, vector<128x512xbf16>, vector<8x512xf32> -> vector<8x512xf32>
    %9 = vector.broadcast %0 : vector<1x512xf32> to vector<8x512xf32>
    %10 = arith.mulf %8, %9 : vector<8x512xf32>
    %11 = vector.broadcast %1 : vector<1x512xf32> to vector<8x512xf32>
    %12 = arith.addf %10, %11 : vector<8x512xf32>
    %cst_14 = arith.constant 0.000000e+00 : f32
    %13 = vector.broadcast %cst_14 : f32 to vector<8x512xf32>
    %14 = arith.maximumf %12, %13 : vector<8x512xf32>
    %15 = arith.truncf %14 : vector<8x512xf32> to vector<8x512xbf16>
    %c0_15 = arith.constant 0 : index
    %c0_16 = arith.constant 0 : index
    %16 = vector.load %arg4[%c0_15, %c0_16] : memref<512x256xbf16, #tpu.memory_space<vmem>>, vector<512x256xbf16>
    %cst_17 = arith.constant dense<0.000000e+00> : vector<8x256xf32>
    %17 = tpu.matmul %15, %16, %cst_17 {dimension_numbers = #tpu.dot_dimension_numbers<[1], [0], [0], [1], [0, 0, 1, 1], [], []>} : vector<8x512xbf16>, vector<512x256xbf16>, vector<8x256xf32> -> vector<8x256xf32>
    %18 = vector.broadcast %2 : vector<1x256xf32> to vector<8x256xf32>
    %19 = arith.mulf %17, %18 : vector<8x256xf32>
    %20 = vector.broadcast %3 : vector<1x256xf32> to vector<8x256xf32>
    %21 = arith.addf %19, %20 : vector<8x256xf32>
    %cst_18 = arith.constant 0.000000e+00 : f32
    %22 = vector.broadcast %cst_18 : f32 to vector<8x256xf32>
    %23 = arith.maximumf %21, %22 : vector<8x256xf32>
    %24 = arith.truncf %23 : vector<8x256xf32> to vector<8x256xbf16>
    %c0_19 = arith.constant 0 : index
    %c0_20 = arith.constant 0 : index
    %25 = vector.load %arg6[%c0_19, %c0_20] : memref<256x128xbf16, #tpu.memory_space<vmem>>, vector<256x128xbf16>
    %cst_21 = arith.constant dense<0.000000e+00> : vector<8x128xf32>
    %26 = tpu.matmul %24, %25, %cst_21 {dimension_numbers = #tpu.dot_dimension_numbers<[1], [0], [0], [1], [0, 0, 1, 1], [], []>} : vector<8x256xbf16>, vector<256x128xbf16>, vector<8x128xf32> -> vector<8x128xf32>
    %27 = vector.broadcast %4 : vector<1x128xf32> to vector<8x128xf32>
    %28 = arith.mulf %26, %27 : vector<8x128xf32>
    %29 = vector.broadcast %5 : vector<1x128xf32> to vector<8x128xf32>
    %30 = arith.addf %28, %29 : vector<8x128xf32>
    %cst_22 = arith.constant 0.000000e+00 : f32
    %31 = vector.broadcast %cst_22 : f32 to vector<8x128xf32>
    %32 = arith.maximumf %30, %31 : vector<8x128xf32>
    %33 = arith.truncf %32 : vector<8x128xf32> to vector<8x128xbf16>
    %c0_23 = arith.constant 0 : index
    %c0_24 = arith.constant 0 : index
    %34 = vector.load %arg8[%c0_23, %c0_24] : memref<128x128xbf16, #tpu.memory_space<vmem>>, vector<128x128xbf16>
    %cst_25 = arith.constant dense<0.000000e+00> : vector<8x128xf32>
    %35 = tpu.matmul %33, %34, %cst_25 {dimension_numbers = #tpu.dot_dimension_numbers<[1], [0], [0], [1], [0, 0, 1, 1], [], []>} : vector<8x128xbf16>, vector<128x128xbf16>, vector<8x128xf32> -> vector<8x128xf32>
    %c0_26 = arith.constant 0 : index
    %c0_27 = arith.constant 0 : index
    %36 = vector.load %arg9[%c0_26, %c0_27] : memref<1x128xf32, #tpu.memory_space<vmem>>, vector<1x128xf32>
    %37 = vector.broadcast %36 : vector<1x128xf32> to vector<8x128xf32>
    %38 = arith.addf %35, %37 : vector<8x128xf32>
    %c0_28 = arith.constant 0 : index
    %c0_29 = arith.constant 0 : index
    %39 = vector.load %arg10[%c0_28, %c0_29] : memref<8x128xf32, #tpu.memory_space<vmem>>, vector<8x128xf32>
    tpu.vector_store %arg10[%c0_28, %c0_29], %38 {strides = array<i32>} : memref<8x128xf32, #tpu.memory_space<vmem>>, vector<8x128xf32>,
    return
  }
  func.func @transform_0(%arg0: i32) -> (i32, i32) {
    %c0_i32 = arith.constant 0 : i32
    %c0_i32_0 = arith.constant 0 : i32
    return %arg0, %c0_i32 : i32, i32
  }
  func.func @transform_1(%arg0: i32) -> (i32, i32) {
    %c0_i32 = arith.constant 0 : i32
    %c0_i32_0 = arith.constant 0 : i32
    %c0_i32_1 = arith.constant 0 : i32
    return %c0_i32, %c0_i32_0 : i32, i32
  }
  func.func @transform_2(%arg0: i32) -> (i32, i32) {
    %c0_i32 = arith.constant 0 : i32
    %c0_i32_0 = arith.constant 0 : i32
    %c0_i32_1 = arith.constant 0 : i32
    return %c0_i32, %c0_i32_0 : i32, i32
  }
  func.func @transform_3(%arg0: i32) -> (i32, i32) {
    %c0_i32 = arith.constant 0 : i32
    %c0_i32_0 = arith.constant 0 : i32
    %c0_i32_1 = arith.constant 0 : i32
    return %c0_i32, %c0_i32_0 : i32, i32
  }
  func.func @transform_4(%arg0: i32) -> (i32, i32) {
    %c0_i32 = arith.constant 0 : i32
    %c0_i32_0 = arith.constant 0 : i32
    %c0_i32_1 = arith.constant 0 : i32
    return %c0_i32, %c0_i32_0 : i32, i32
  }
  func.func @transform_5(%arg0: i32) -> (i32, i32) {
    %c0_i32 = arith.constant 0 : i32
    %c0_i32_0 = arith.constant 0 : i32
    %c0_i32_1 = arith.constant 0 : i32
    return %c0_i32, %c0_i32_0 : i32, i32
  }
  func.func @transform_6(%arg0: i32) -> (i32, i32) {
    %c0_i32 = arith.constant 0 : i32
    %c0_i32_0 = arith.constant 0 : i32
    %c0_i32_1 = arith.constant 0 : i32
    return %c0_i32, %c0_i32_0 : i32, i32
  }
  func.func @transform_7(%arg0: i32) -> (i32, i32) {
    %c0_i32 = arith.constant 0 : i32
    %c0_i32_0 = arith.constant 0 : i32
    %c0_i32_1 = arith.constant 0 : i32
    return %c0_i32, %c0_i32_0 : i32, i32
  }
  func.func @transform_8(%arg0: i32) -> (i32, i32) {
    %c0_i32 = arith.constant 0 : i32
    %c0_i32_0 = arith.constant 0 : i32
    %c0_i32_1 = arith.constant 0 : i32
    return %c0_i32, %c0_i32_0 : i32, i32
  }
  func.func @transform_9(%arg0: i32) -> (i32, i32) {
    %c0_i32 = arith.constant 0 : i32
    %c0_i32_0 = arith.constant 0 : i32
    return %arg0, %c0_i32 : i32, i32
  }
}

</mosaic_0001>

<bundles_post_ra>
// kernel: mlp_forward.1
= control target key start
LH: loop header
LB: loop body
LE: loop exit
PB: predicated region body
PF: predicated region fallthrough
CT: control target
= control target key end

     0   :  { %14 = vsyncpa [#allocation3], 0  ;;  %s1816_s0 = inlined_call_operand.vmem [shape: bf16[8,128], index: 0, kind: input, shape index: {}]   ;;  %s1817_s1 = inlined_call_operand.hbm [shape: bf16[128,512], index: 1, kind: input, shape index: {}]   ;;  %s1818_s2 = inlined_call_operand.vmem [shape: f32[2,512], index: 2, kind: input, shape index: {}]   ;;  %s1819_s3 = inlined_call_operand.hbm [shape: bf16[512,256], index: 3, kind: input, shape index: {}]   ;;  %s1820_s4 = inlined_call_operand.vmem [shape: f32[2,256], index: 4, kind: input, shape index: {}]   ;;  %s1821_s5 = inlined_call_operand.hbm [shape: bf16[256,128], index: 5, kind: input, shape index: {}]   ;;  %s1822_s6 = inlined_call_operand.vmem [shape: f32[2,128], index: 6, kind: input, shape index: {}]   ;;  %s1823_s7 = inlined_call_operand.hbm [shape: bf16[128,128], index: 7, kind: input, shape index: {}]   ;;  %s1824_s8 = inlined_call_operand.vmem [shape: f32[1,128], index: 8, kind: input, shape index: {}]   ;;  %s1825_s9 = inlined_call_operand.hbm [shape: f32[8,128], index: 9, kind: output, shape index: {}]  }
   0x1   :  { %15 = vsyncpa [#allocation6], 0 }
   0x2   :  { %16 = vsyncpa [#allocation9], 0 }
   0x3   :  { %17 = vsyncpa [#allocation4], 0  ;;  %s1701_s30 = smov [#allocation5]  }
   0x4   :  { %s39_s10 = sshll.u32 %s1701_s30, 4  ;;  %s40_s10 = int_to_ptr.vmem [resolvable:$true] %s39_s10 }
   0x5   :  { %s1601_s11 = scalar_lea.vmem %s40_s10, 8192  ;;  %p1606_p1 = scmp.lt.s32.totalorder %s40_s10, %s40_s10 }
   0x6   :  { %p1602_p0 = scmp.ne.s32.totalorder %s40_s10, %s1601_s11  ;;  %p1607_p2 = scmp.lt.s32.totalorder %s1601_s11, %s1601_s11 }
   0x8   :  { %p1608_p3 = por %p1607_p2, %p1606_p1 }
   0xa   :  { %p1609_p4 = pnand %p1608_p3, %p1602_p0 }
   0xc   :  { %1612 = shalt.err (!%p1609_p4)
}
   0xd   :  { %s1702_s12 = smov 128   ;;  %s1703_s13 = smov 8  }
   0xe   :  { %45 = dma.hbm_to_vmem [thread:$0]  %s1819_s3, 8192, %s40_s10, [#allocation6], %s1702_s12, %s1702_s12, %s1703_s13  }
   0xf   :  { %s1704_s16 = smov [#allocation2]  }
  0x10   :  { %s25_s17 = sshll.u32 %s1704_s16, 4  ;;  %s26_s17 = int_to_ptr.vmem [resolvable:$true] %s25_s17 }
  0x11   :  { %s1621_s18 = scalar_lea.vmem %s26_s17, 4096  ;;  %p1626_p6 = scmp.lt.s32.totalorder %s26_s17, %s26_s17 }
  0x12   :  { %p1622_p5 = scmp.ne.s32.totalorder %s26_s17, %s1621_s18  ;;  %p1627_p7 = scmp.lt.s32.totalorder %s1621_s18, %s1621_s18 }
  0x14   :  { %p1628_p8 = por %p1627_p7, %p1626_p6 }
  0x16   :  { %p1629_p9 = pnand %p1628_p8, %p1622_p5 }
  0x18   :  { %1632 = shalt.err (!%p1629_p9)
}
  0x19   :  { %s1705_s19 = smov 256   ;;  %s1706_s20 = smov 16  }
  0x1a   :  { %31 = dma.hbm_to_vmem [thread:$0]  %s1817_s1, 4096, %s26_s17, [#allocation3], %s1705_s19, %s1705_s19, %s1706_s20  }
  0x1b   :  { %s1707_s23 = smov [#allocation7]  }
  0x1c   :  { %s53_s24 = sshll.u32 %s1707_s23, 4  ;;  %s54_s24 = int_to_ptr.vmem [resolvable:$true] %s53_s24 }
  0x1d   :  { %s1641_s3 = scalar_lea.vmem %s54_s24, 2048  ;;  %p1646_p11 = scmp.lt.s32.totalorder %s54_s24, %s54_s24 }
  0x1e   :  { %p1642_p10 = scmp.ne.s32.totalorder %s54_s24, %s1641_s3  ;;  %p1647_p12 = scmp.lt.s32.totalorder %s1641_s3, %s1641_s3 }
  0x20   :  { %p1648_p13 = por %p1647_p12, %p1646_p11 }
  0x22   :  { %p1649_p0 = pnand %p1648_p13, %p1642_p10 }
  0x24   :  { %1652 = shalt.err (!%p1649_p0)
}
  0x25   :  { %s1708_s25 = smov 64   ;;  %s1709_s26 = smov 4  }
  0x26   :  { %59 = dma.hbm_to_vmem [thread:$0]  %s1821_s5, 2048, %s54_s24, [#allocation6], %s1708_s25, %s1708_s25, %s1709_s26  }
  0x27   :  { %s1710_s29 = smov [#allocation8]  }
  0x28   :  { %s67_s30 = sshll.u32 %s1710_s29, 4  ;;  %s68_s30 = int_to_ptr.vmem [resolvable:$true] %s67_s30 }
  0x29   :  { %s1661_s1 = scalar_lea.vmem %s68_s30, 1024  ;;  %p1666_p2 = scmp.lt.s32.totalorder %s68_s30, %s68_s30 }
  0x2a   :  { %p1662_p1 = scmp.ne.s32.totalorder %s68_s30, %s1661_s1  ;;  %p1667_p3 = scmp.lt.s32.totalorder %s1661_s1, %s1661_s1 }
  0x2c   :  { %p1668_p4 = por %p1667_p3, %p1666_p2 }
  0x2e   :  { %p1669_p5 = pnand %p1668_p4, %p1662_p1 }
  0x30   :  { %1672 = shalt.err (!%p1669_p5)
}
  0x31   :  { %73 = dma.hbm_to_vmem [thread:$0]  %s1823_s7, 1024, %s68_s30, [#allocation9], %s1708_s25, %s1708_s25, %s1709_s26  }
  0x32   :  { %1693 = dma.done.wait [#allocation3], 4096  }
  0x33   :  { %1694 = vsyncadd [#allocation3], 4294963200 }
  0x34   :  { %1695 = dma.done.wait [#allocation6], 10240  }
  0x35   :  { %1696 = vsyncadd [#allocation6], 4294957056 }
  0x36   :  { %1697 = dma.done.wait [#allocation9], 1024  }
  0x37   :  { %1698 = vsyncadd [#allocation9], 4294966272  ;;  %v1711_v0 = vmov 0   ;;  %v1425_v1 = vld [vmem:[#allocation2 + $0xe4] ss:$16 sps:$4 sm:$0xff]   ;;  %vm1713_vm0 = vmmov 0  }
  0x38   :  { %322 = vmatprep.mubr.bf16.mxu0 %v1711_v0  ;;  %363 = vmatprep.mubr.bf16.mxu1 %v1711_v0  ;;  %v1427_v2 = vld [vmem:[#allocation2 + $0xec] ss:$16 sps:$4 sm:$0xff]   ;;  %v1429_v3 = vld [vmem:[#allocation2 + $0xe0] ss:$16 sps:$4 sm:$0xff]   ;;  %v1430_v4 = vld [vmem:[#allocation2 + $0xe8] ss:$16 sps:$4 sm:$0xff]  }
  0x39   :  { %290 = vmatprep.subr.bf16.mxu0 %v1425_v1  ;;  %331 = vmatprep.subr.bf16.mxu1 %v1427_v2  ;;  %v1431_v5 = vld [vmem:[#allocation2 + $0xc4] ss:$16 sps:$4 sm:$0xff]   ;;  %v1433_v6 = vld [vmem:[#allocation2 + $0xcc] ss:$16 sps:$4 sm:$0xff]   ;;  %v1435_v7 = vld [vmem:[#allocation2 + $0xc0] ss:$16 sps:$4 sm:$0xff]  }
  0x3a   :  { %291 = vmatpush1.bf16.msra.mxu0 %v1429_v3  ;;  %332 = vmatpush1.bf16.msra.mxu1 %v1430_v4  ;;  %v1436_v8 = vld [vmem:[#allocation2 + $0xc8] ss:$16 sps:$4 sm:$0xff]   ;;  %v1437_v9 = vld [vmem:[#allocation2 + $0xa4] ss:$16 sps:$4 sm:$0xff]   ;;  %v1439_v10 = vld [vmem:[#allocation2 + $0xac] ss:$16 sps:$4 sm:$0xff]  }
  0x3b   :  { %292 = vmatprep.subr.bf16.mxu0 %v1431_v5  ;;  %333 = vmatprep.subr.bf16.mxu1 %v1433_v6  ;;  %v1441_v11 = vld [vmem:[#allocation2 + $0xa0] ss:$16 sps:$4 sm:$0xff]   ;;  %v1442_v12 = vld [vmem:[#allocation2 + $0xa8] ss:$16 sps:$4 sm:$0xff]   ;;  %v1443_v13 = vld [vmem:[#allocation2 + $0x84] ss:$16 sps:$4 sm:$0xff]  }
  0x3c   :  { %v1445_v14 = vld [vmem:[#allocation2 + $0x8c] ss:$16 sps:$4 sm:$0xff]   ;;  %v1447_v15 = vld [vmem:[#allocation2 + $0x80] ss:$16 sps:$4 sm:$0xff]   ;;  %v1448_v16 = vld [vmem:[#allocation2 + $0x88] ss:$16 sps:$4 sm:$0xff]  }
  0x3d   :  { %v1449_v17 = vld [vmem:[#allocation2 + $0x64] ss:$16 sps:$4 sm:$0xff]   ;;  %v1451_v18 = vld [vmem:[#allocation2 + $0x6c] ss:$16 sps:$4 sm:$0xff]   ;;  %v1453_v19 = vld [vmem:[#allocation2 + $0x60] ss:$16 sps:$4 sm:$0xff]  }
  0x3e   :  { %293 = vmatpush1.bf16.msra.mxu0 %v1435_v7  ;;  %334 = vmatpush1.bf16.msra.mxu1 %v1436_v8  ;;  %v1454_v20 = vld [vmem:[#allocation2 + $0x68] ss:$16 sps:$4 sm:$0xff]   ;;  %v1455_v21 = vld [vmem:[#allocation2 + $0x44] ss:$16 sps:$4 sm:$0xff]   ;;  %v1457_v22 = vld [vmem:[#allocation2 + $0x4c] ss:$16 sps:$4 sm:$0xff]  }
  0x3f   :  { %294 = vmatprep.subr.bf16.mxu0 %v1437_v9  ;;  %335 = vmatprep.subr.bf16.mxu1 %v1439_v10  ;;  %v1459_v23 = vld [vmem:[#allocation2 + $0x40] ss:$16 sps:$4 sm:$0xff]   ;;  %v1460_v24 = vld [vmem:[#allocation2 + $0x48] ss:$16 sps:$4 sm:$0xff]   ;;  %v1461_v25 = vld [vmem:[#allocation2 + $0x24] ss:$16 sps:$4 sm:$0xff]  }
  0x40   :  { %v1463_v26 = vld [vmem:[#allocation2 + $0x2c] ss:$16 sps:$4 sm:$0xff]   ;;  %v1465_v27 = vld [vmem:[#allocation2 + $0x20] ss:$16 sps:$4 sm:$0xff]   ;;  %v1466_v28 = vld [vmem:[#allocation2 + $0x28] ss:$16 sps:$4 sm:$0xff]  }
  0x41   :  { %v1467_v29 = vld [vmem:[#allocation2 + $0x4] ss:$16 sps:$4 sm:$0xff]   ;;  %v1469_v30 = vld [vmem:[#allocation2 + $0xc] ss:$16 sps:$4 sm:$0xff]   ;;  %v1471_v31 = vld [vmem:[#allocation2] ss:$16 sps:$4 sm:$0xff]  }
  0x42   :  { %295 = vmatpush1.bf16.msra.mxu0 %v1441_v11  ;;  %336 = vmatpush1.bf16.msra.mxu1 %v1442_v12  ;;  %v1472_v32 = vld [vmem:[#allocation2 + $0x8] ss:$16 sps:$4 sm:$0xff]   ;;  %v1475_v33 = vld [vmem:[#allocation5 + $0x74] ss:$8 sps:$4 sm:$0xff]   ;;  %v97_v35 = vld [vmem:[%s1816_s0] sm:$0xf] }
  0x43   :  { %296 = vmatprep.subr.bf16.mxu0 %v1443_v13  ;;  %337 = vmatprep.subr.bf16.mxu1 %v1445_v14  ;;  %v1478_v34 = vld [vmem:[#allocation5 + $0x174] ss:$8 sps:$4 sm:$0xff]   ;;  %v1473_v36 = vld [vmem:[#allocation5 + $0x70] ss:$8 sps:$4 sm:$0xff]   ;;  %v1481_v38 = vld [vmem:[#allocation5 + $0x64] ss:$8 sps:$4 sm:$0xff]  }
  0x44   :  { %v1476_v37 = vld [vmem:[#allocation5 + $0x170] ss:$8 sps:$4 sm:$0xff]   ;;  %v1484_v39 = vld [vmem:[#allocation5 + $0x164] ss:$8 sps:$4 sm:$0xff]   ;;  %v1479_v40 = vld [vmem:[#allocation5 + $0x60] ss:$8 sps:$4 sm:$0xff]  }
  0x45   :  { %v1482_v41 = vld [vmem:[#allocation5 + $0x160] ss:$8 sps:$4 sm:$0xff]   ;;  %v1487_v42 = vld [vmem:[#allocation5 + $0x54] ss:$8 sps:$4 sm:$0xff]   ;;  %v1485_v44 = vld [vmem:[#allocation5 + $0x50] ss:$8 sps:$4 sm:$0xff]  }
  0x46   :  { %297 = vmatpush1.bf16.msra.mxu0 %v1447_v15  ;;  %338 = vmatpush1.bf16.msra.mxu1 %v1448_v16  ;;  %v1490_v43 = vld [vmem:[#allocation5 + $0x154] ss:$8 sps:$4 sm:$0xff]   ;;  %v1488_v45 = vld [vmem:[#allocation5 + $0x150] ss:$8 sps:$4 sm:$0xff]   ;;  %v1493_v46 = vld [vmem:[#allocation5 + $0x44] ss:$8 sps:$4 sm:$0xff]  }
  0x47   :  { %298 = vmatprep.subr.bf16.mxu0 %v1449_v17  ;;  %339 = vmatprep.subr.bf16.mxu1 %v1451_v18  ;;  %v1496_v47 = vld [vmem:[#allocation5 + $0x144] ss:$8 sps:$4 sm:$0xff]   ;;  %v1491_v48 = vld [vmem:[#allocation5 + $0x40] ss:$8 sps:$4 sm:$0xff]   ;;  %v1499_v50 = vld [vmem:[#allocation5 + $0x34] ss:$8 sps:$4 sm:$0xff]  }
  0x48   :  { %v1494_v49 = vld [vmem:[#allocation5 + $0x140] ss:$8 sps:$4 sm:$0xff]   ;;  %v1502_v51 = vld [vmem:[#allocation5 + $0x134] ss:$8 sps:$4 sm:$0xff]   ;;  %v1497_v52 = vld [vmem:[#allocation5 + $0x30] ss:$8 sps:$4 sm:$0xff]  }
  0x49   :  { %v1500_v53 = vld [vmem:[#allocation5 + $0x130] ss:$8 sps:$4 sm:$0xff]   ;;  %v1505_v54 = vld [vmem:[#allocation5 + $0x24] ss:$8 sps:$4 sm:$0xff]   ;;  %v1503_v56 = vld [vmem:[#allocation5 + $0x20] ss:$8 sps:$4 sm:$0xff]  }
  0x4a   :  { %299 = vmatpush1.bf16.msra.mxu0 %v1453_v19  ;;  %340 = vmatpush1.bf16.msra.mxu1 %v1454_v20  ;;  %v1508_v55 = vld [vmem:[#allocation5 + $0x124] ss:$8 sps:$4 sm:$0xff]   ;;  %v1506_v57 = vld [vmem:[#allocation5 + $0x120] ss:$8 sps:$4 sm:$0xff]   ;;  %v1511_v58 = vld [vmem:[#allocation5 + $0x14] ss:$8 sps:$4 sm:$0xff]  }
  0x4b   :  { %300 = vmatprep.subr.bf16.mxu0 %v1455_v21  ;;  %341 = vmatprep.subr.bf16.mxu1 %v1457_v22  ;;  %v1514_v59 = vld [vmem:[#allocation5 + $0x114] ss:$8 sps:$4 sm:$0xff]   ;;  %v1509_v60 = vld [vmem:[#allocation5 + $0x10] ss:$8 sps:$4 sm:$0xff]   ;;  %v1517_v62 = vld [vmem:[#allocation5 + $0x4] ss:$8 sps:$4 sm:$0xff]  }
  0x4c   :  { %v1512_v61 = vld [vmem:[#allocation5 + $0x110] ss:$8 sps:$4 sm:$0xff]   ;;  %v1520_v63 = vld [vmem:[#allocation5 + $0x104] ss:$8 sps:$4 sm:$0xff]   ;;  %v1515_v0 = vld [vmem:[#allocation5] ss:$8 sps:$4 sm:$0xff]  }
  0x4d   :  { %v1518_v1 = vld [vmem:[#allocation5 + $0x100] ss:$8 sps:$4 sm:$0xff]   ;;  %v1523_v2 = vld [vmem:[#allocation5 + $0xf4] ss:$8 sps:$4 sm:$0xff]   ;;  %v1521_v4 = vld [vmem:[#allocation5 + $0xf0] ss:$8 sps:$4 sm:$0xff]  }
  0x4e   :  { %301 = vmatpush1.bf16.msra.mxu0 %v1459_v23  ;;  %342 = vmatpush1.bf16.msra.mxu1 %v1460_v24  ;;  %v1526_v3 = vld [vmem:[#allocation5 + $0x1f4] ss:$8 sps:$4 sm:$0xff]   ;;  %v1524_v5 = vld [vmem:[#allocation5 + $0x1f0] ss:$8 sps:$4 sm:$0xff]   ;;  %v1529_v6 = vld [vmem:[#allocation5 + $0xe4] ss:$8 sps:$4 sm:$0xff]  }
  0x4f   :  { %302 = vmatprep.subr.bf16.mxu0 %v1461_v25  ;;  %343 = vmatprep.subr.bf16.mxu1 %v1463_v26  ;;  %v1532_v7 = vld [vmem:[#allocation5 + $0x1e4] ss:$8 sps:$4 sm:$0xff]   ;;  %v1527_v8 = vld [vmem:[#allocation5 + $0xe0] ss:$8 sps:$4 sm:$0xff]   ;;  %v1535_v10 = vld [vmem:[#allocation5 + $0xd4] ss:$8 sps:$4 sm:$0xff]  }
  0x50   :  { %v1530_v9 = vld [vmem:[#allocation5 + $0x1e0] ss:$8 sps:$4 sm:$0xff]   ;;  %v1538_v11 = vld [vmem:[#allocation5 + $0x1d4] ss:$8 sps:$4 sm:$0xff]   ;;  %v1533_v12 = vld [vmem:[#allocation5 + $0xd0] ss:$8 sps:$4 sm:$0xff]  }
  0x51   :  { %v1536_v13 = vld [vmem:[#allocation5 + $0x1d0] ss:$8 sps:$4 sm:$0xff]   ;;  %v1541_v14 = vld [vmem:[#allocation5 + $0xc4] ss:$8 sps:$4 sm:$0xff]   ;;  %v1539_v16 = vld [vmem:[#allocation5 + $0xc0] ss:$8 sps:$4 sm:$0xff]  }
  0x52   :  { %303 = vmatpush1.bf16.msra.mxu0 %v1465_v27  ;;  %344 = vmatpush1.bf16.msra.mxu1 %v1466_v28  ;;  %v1544_v15 = vld [vmem:[#allocation5 + $0x1c4] ss:$8 sps:$4 sm:$0xff]   ;;  %v1542_v17 = vld [vmem:[#allocation5 + $0x1c0] ss:$8 sps:$4 sm:$0xff]   ;;  %v1547_v18 = vld [vmem:[#allocation5 + $0xb4] ss:$8 sps:$4 sm:$0xff]  }
  0x53   :  { %304 = vmatprep.subr.bf16.mxu0 %v1467_v29  ;;  %345 = vmatprep.subr.bf16.mxu1 %v1469_v30  ;;  %v1550_v19 = vld [vmem:[#allocation5 + $0x1b4] ss:$8 sps:$4 sm:$0xff]   ;;  %v1545_v20 = vld [vmem:[#allocation5 + $0xb0] ss:$8 sps:$4 sm:$0xff]   ;;  %v1553_v22 = vld [vmem:[#allocation5 + $0xa4] ss:$8 sps:$4 sm:$0xff]  }
  0x54   :  { %v1548_v21 = vld [vmem:[#allocation5 + $0x1b0] ss:$8 sps:$4 sm:$0xff]   ;;  %v1556_v23 = vld [vmem:[#allocation5 + $0x1a4] ss:$8 sps:$4 sm:$0xff]   ;;  %v1551_v24 = vld [vmem:[#allocation5 + $0xa0] ss:$8 sps:$4 sm:$0xff]  }
  0x55   :  { %v1554_v25 = vld [vmem:[#allocation5 + $0x1a0] ss:$8 sps:$4 sm:$0xff]   ;;  %v1559_v26 = vld [vmem:[#allocation5 + $0x94] ss:$8 sps:$4 sm:$0xff]   ;;  %v1557_v28 = vld [vmem:[#allocation5 + $0x90] ss:$8 sps:$4 sm:$0xff]  }
  0x56   :  { %305 = vmatpush1.bf16.msra.mxu0 %v1471_v31  ;;  %346 = vmatpush1.bf16.msra.mxu1 %v1472_v32  ;;  %v1562_v27 = vld [vmem:[#allocation5 + $0x194] ss:$8 sps:$4 sm:$0xff]   ;;  %v1560_v29 = vld [vmem:[#allocation5 + $0x190] ss:$8 sps:$4 sm:$0xff]   ;;  %v1565_v30 = vld [vmem:[#allocation5 + $0x84] ss:$8 sps:$4 sm:$0xff]  }
  0x57   :  { %814 = vmatprep.subr.bf16.mxu0 %v1475_v33  ;;  %855 = vmatprep.subr.bf16.mxu1 %v1478_v34  ;;  %v1568_v31 = vld [vmem:[#allocation5 + $0x184] ss:$8 sps:$4 sm:$0xff]   ;;  %v1563_v32 = vld [vmem:[#allocation5 + $0x80] ss:$8 sps:$4 sm:$0xff]   ;;  %v1569_v34 = vld [vmem:[#allocation7 + $0x78] sm:$0xff]   ;;  %s1714_s23 = smov [#allocation10]  }
  0x58   :  { %v1566_v33 = vld [vmem:[#allocation5 + $0x180] ss:$8 sps:$4 sm:$0xff]   ;;  %s1224_s24 = sshll.u32 %s1714_s23, 4  ;;  %s1225_s24 = int_to_ptr.vmem [resolvable:$true] %s1224_s24 }
  0x59   :  { %323 = vmatmul.mubr.bf16.vlgmr.msra.gmra.mxu0 %v97_v35  ;;  %364 = vmatmul.mubr.bf16.vlgmr.msra.gmra.mxu1 %v97_v35  ;;  %v373_v35 = vlaneseq  ;;  %p1678_p7 = scmp.lt.s32.totalorder %s1225_s24, %s1225_s24 }
  0x5a   :  { %815 = vmatpush1.bf16.msra.mxu0 %v1473_v36  ;;  %856 = vmatpush1.bf16.msra.mxu1 %v1476_v37 }
  0x5b   :  { %816 = vmatprep.subr.bf16.mxu0 %v1481_v38  ;;  %857 = vmatprep.subr.bf16.mxu1 %v1484_v39  ;;  %v374_v36 = vshrl.u32 %v373_v35, 7  ;;  %v89_v39 = vld [vmem:[%s1818_s2] ss:$2 sm:$0xf] }
  0x5d   :  { %v1780_v37 = vsub.s32 0, %v374_v36  ;;  %v383_v38 = vsub.s32 2, %v374_v36 }
  0x5e   :  { %817 = vmatpush1.bf16.msra.mxu0 %v1479_v40  ;;  %858 = vmatpush1.bf16.msra.mxu1 %v1482_v41  ;;  %v1785_v40 = vsub.s32 1, %v374_v36  ;;  %v387_v41 = vsub.s32 3, %v374_v36 }
  0x5f   :  { %818 = vmatprep.subr.bf16.mxu0 %v1487_v42  ;;  %859 = vmatprep.subr.bf16.mxu1 %v1490_v43  ;;  %v1235_v42 = vld [vmem:[%s1818_s2 + $0x1] ss:$2 sm:$0xf]  ;;  %v376_v43 = vrot.slane %v89_v39, %v1780_v37 }
  0x62   :  { %819 = vmatpush1.bf16.msra.mxu0 %v1485_v44  ;;  %860 = vmatpush1.bf16.msra.mxu1 %v1488_v45  ;;  %v384_v44 = vrot.slane %v89_v39, %v383_v38  ;;  %v401_v45 = vrot.slane %v1235_v42, %v1780_v37 }
  0x63   :  { %820 = vmatprep.subr.bf16.mxu0 %v1493_v46  ;;  %861 = vmatprep.subr.bf16.mxu1 %v1496_v47  ;;  %v409_v46 = vrot.slane %v1235_v42, %v383_v38  ;;  %v380_v47 = vrot.slane %v89_v39, %v1785_v40 }
  0x66   :  { %821 = vmatpush1.bf16.msra.mxu0 %v1491_v48  ;;  %862 = vmatpush1.bf16.msra.mxu1 %v1494_v49  ;;  %v388_v48 = vrot.slane %v89_v39, %v387_v41 }
  0x67   :  { %822 = vmatprep.subr.bf16.mxu0 %v1499_v50  ;;  %863 = vmatprep.subr.bf16.mxu1 %v1502_v51 }
  0x6a   :  { %823 = vmatpush1.bf16.msra.mxu0 %v1497_v52  ;;  %864 = vmatpush1.bf16.msra.mxu1 %v1500_v53  ;;  %v405_v53 = vrot.slane %v1235_v42, %v1785_v40 }
  0x6b   :  { %824 = vmatprep.subr.bf16.mxu0 %v1505_v54  ;;  %865 = vmatprep.subr.bf16.mxu1 %v1508_v55  ;;  %v413_v54 = vrot.slane %v1235_v42, %v387_v41 }
  0x6e   :  { %825 = vmatpush1.bf16.msra.mxu0 %v1503_v56  ;;  %866 = vmatpush1.bf16.msra.mxu1 %v1506_v57 }
  0x6f   :  { %826 = vmatprep.subr.bf16.mxu0 %v1511_v58  ;;  %867 = vmatprep.subr.bf16.mxu1 %v1514_v59 }
  0x72   :  { %827 = vmatpush1.bf16.msra.mxu0 %v1509_v60  ;;  %868 = vmatpush1.bf16.msra.mxu1 %v1512_v61 }
  0x73   :  { %828 = vmatprep.subr.bf16.mxu0 %v1517_v62  ;;  %869 = vmatprep.subr.bf16.mxu1 %v1520_v63 }
  0x76   :  { %829 = vmatpush1.bf16.msra.mxu0 %v1515_v0  ;;  %870 = vmatpush1.bf16.msra.mxu1 %v1518_v1 }
  0x77   :  { %830 = vmatprep.subr.bf16.mxu0 %v1523_v2  ;;  %871 = vmatprep.subr.bf16.mxu1 %v1526_v3 }
  0x7a   :  { %831 = vmatpush2.bf16.msra.mxu0 %v1521_v4  ;;  %872 = vmatpush2.bf16.msra.mxu1 %v1524_v5 }
  0x7b   :  { %832 = vmatprep.subr.bf16.mxu0 %v1529_v6  ;;  %873 = vmatprep.subr.bf16.mxu1 %v1532_v7 }
  0x7e   :  { %833 = vmatpush2.bf16.msra.mxu0 %v1527_v8  ;;  %874 = vmatpush2.bf16.msra.mxu1 %v1530_v9  ;;  %v1570_v9 = vld [vmem:[#allocation7 + $0x38] sm:$0xff]  }
  0x7f   :  { %834 = vmatprep.subr.bf16.mxu0 %v1535_v10  ;;  %875 = vmatprep.subr.bf16.mxu1 %v1538_v11 }
  0x82   :  { %835 = vmatpush2.bf16.msra.mxu0 %v1533_v12  ;;  %876 = vmatpush2.bf16.msra.mxu1 %v1536_v13  ;;  %v1571_v12 = vld [vmem:[#allocation7 + $0x70] sm:$0xff]  }
  0x83   :  { %836 = vmatprep.subr.bf16.mxu0 %v1541_v14  ;;  %877 = vmatprep.subr.bf16.mxu1 %v1544_v15  ;;  %v1572_v13 = vld [vmem:[#allocation7 + $0x30] sm:$0xff]   ;;  %v1573_v14 = vld [vmem:[#allocation7 + $0x68] sm:$0xff]  }
  0x84   :  { %v1574_v15 = vld [vmem:[#allocation7 + $0x28] sm:$0xff]  }
  0x86   :  { %837 = vmatpush2.bf16.msra.mxu0 %v1539_v16  ;;  %878 = vmatpush2.bf16.msra.mxu1 %v1542_v17  ;;  %v1575_v16 = vld [vmem:[#allocation7 + $0x60] sm:$0xff]  }
  0x87   :  { %838 = vmatprep.subr.bf16.mxu0 %v1547_v18  ;;  %879 = vmatprep.subr.bf16.mxu1 %v1550_v19  ;;  %v1576_v17 = vld [vmem:[#allocation7 + $0x20] sm:$0xff]   ;;  %v1577_v18 = vld [vmem:[#allocation7 + $0x58] sm:$0xff]  }
  0x88   :  { %v1578_v19 = vld [vmem:[#allocation7 + $0x18] sm:$0xff]  }
  0x8a   :  { %839 = vmatpush2.bf16.msra.mxu0 %v1545_v20  ;;  %880 = vmatpush2.bf16.msra.mxu1 %v1548_v21  ;;  %v1579_v20 = vld [vmem:[#allocation7 + $0x50] sm:$0xff]  }
  0x8b   :  { %840 = vmatprep.subr.bf16.mxu0 %v1553_v22  ;;  %881 = vmatprep.subr.bf16.mxu1 %v1556_v23  ;;  %v1580_v21 = vld [vmem:[#allocation7 + $0x10] sm:$0xff]   ;;  %v1581_v22 = vld [vmem:[#allocation7 + $0x48] sm:$0xff]  }
  0x8c   :  { %v1582_v23 = vld [vmem:[#allocation7 + $0x8] sm:$0xff]  }
  0x8e   :  { %841 = vmatpush2.bf16.msra.mxu0 %v1551_v24  ;;  %882 = vmatpush2.bf16.msra.mxu1 %v1554_v25  ;;  %v1583_v24 = vld [vmem:[#allocation7 + $0x40] sm:$0xff]  }
  0x8f   :  { %842 = vmatprep.subr.bf16.mxu0 %v1559_v26  ;;  %883 = vmatprep.subr.bf16.mxu1 %v1562_v27  ;;  %v1584_v25 = vld [vmem:[#allocation7] sm:$0xff]   ;;  %v1585_v26 = vld [vmem:[#allocation8 + $0x38] sm:$0xff]   ;;  %v1712_v27 = vmov 0.0  }
  0x92   :  { %843 = vmatpush2.bf16.msra.mxu0 %v1557_v28  ;;  %884 = vmatpush2.bf16.msra.mxu1 %v1560_v29  ;;  %v1586_v28 = vld [vmem:[#allocation8 + $0x30] sm:$0xff]   ;;  %v1587_v29 = vld [vmem:[#allocation8 + $0x28] sm:$0xff]  }
  0x93   :  { %844 = vmatprep.subr.bf16.mxu0 %v1565_v30  ;;  %885 = vmatprep.subr.bf16.mxu1 %v1568_v31  ;;  %v1588_v30 = vld [vmem:[#allocation8 + $0x20] sm:$0xff]   ;;  %v1589_v31 = vld [vmem:[#allocation8 + $0x18] sm:$0xff]  }
  0x96   :  { %845 = vmatpush2.bf16.msra.mxu0 %v1563_v32  ;;  %886 = vmatpush2.bf16.msra.mxu1 %v1566_v33  ;;  %v92_v32 = vld [vmem:[%s1820_s4] ss:$2 sm:$0x3]  ;;  %v1236_v33 = vld [vmem:[%s1820_s4 + $0x1] ss:$2 sm:$0x3] }
  0x97   :  { %1360 = vmatprep.subr.bf16.mxu0 %v1569_v34  ;;  %1391 = vmatprep.subr.bf16.mxu1 %v1712_v27  ;;  %v900_v34 = vrot.slane %v92_v32, %v1780_v37  ;;  %v913_v39 = vrot.slane %v1236_v33, %v1780_v37  ;;  %v904_v41 = vrot.slane %v92_v32, %v1785_v40  ;;  %v1590_v37 = vld [vmem:[#allocation8 + $0x10] sm:$0xff]  }
 0x119   :  { %v324_v49 = vpop.f32.mrf.mxu0  ;;  %v365_v50 = vpop.f32.mrf.mxu1 }
 0x11a   :  { %v393_v51 = vmul.f32 %v376_v43, %v324_v49  ;;  %v395_v52 = vmul.f32 %v384_v44, %v365_v50 }
 0x11b   :  { %v326_v55 = vpop.f32.mrf.mxu0  ;;  %v367_v56 = vpop.f32.mrf.mxu1 }
 0x11c   :  { %v418_v57 = vadd.f32 %v401_v45, %v393_v51  ;;  %v420_v58 = vadd.f32 %v409_v46, %v395_v52  ;;  %v394_v59 = vmul.f32 %v380_v47, %v326_v55  ;;  %v396_v60 = vmul.f32 %v388_v48, %v367_v56 }
 0x11d   :  { %v328_v61 = vpop.f32.mrf.mxu0  ;;  %v369_v62 = vpop.f32.mrf.mxu1  ;;  %v917_v46 = vrot.slane %v1236_v33, %v1785_v40  ;;  %v1592_v40 = vld [vmem:[#allocation8] sm:$0xff]  }
 0x11e   :  { %v419_v63 = vadd.f32 %v405_v53, %v394_v59  ;;  %v421_v0 = vadd.f32 %v413_v54, %v396_v60  ;;  %v422_v1 = vmax.f32 %v418_v57, 0.0  ;;  %v424_v2 = vmax.f32 %v420_v58, 0.0  ;;  %v1591_v58 = vld [vmem:[#allocation8 + $0x8] sm:$0xff]   ;;  %v1349_v60 = vld [vmem:[%s1822_s6] ss:$0 sm:$0xff] }
 0x11f   :  { %v329_v3 = vpop.f32.mrf.mxu0  ;;  %v370_v4 = vpop.f32.mrf.mxu1 }
 0x120   :  { %v423_v5 = vmax.f32 %v419_v63, 0.0  ;;  %v425_v6 = vmax.f32 %v421_v0, 0.0  ;;  %v426_v10 = vpack.c.bf16 %v422_v1, %v422_v1  ;;  %v428_v11 = vpack.c.bf16 %v424_v2, %v424_v2  ;;  %v1350_v63 = vld [vmem:[%s1822_s6 + $0x1] ss:$0 sm:$0xff]  ;;  %s1673_s6 = scalar_lea.vmem %s1225_s24, 128 }
 0x121   :  { %p1674_p6 = scmp.ne.s32.totalorder %s1225_s24, %s1673_s6  ;;  %p1679_p8 = scmp.lt.s32.totalorder %s1673_s6, %s1673_s6 }
 0x122   :  { %v427_v7 = vpack.c.bf16 %v423_v5, %v423_v5  ;;  %v429_v8 = vpack.c.bf16 %v425_v6, %v425_v6  ;;  %v1351_v6 = vld [vmem:[%s1824_s8] ss:$0 sm:$0xff] }
 0x123   :  { %p1680_p9 = por %p1679_p8, %p1678_p7 }
 0x124   :  { %846 = vmatprep.mubr.bf16.mxu0 %v427_v7  ;;  %887 = vmatprep.mubr.bf16.mxu1 %v429_v8 }
 0x125   :  { %847 = vmatmul.mubr.bf16.vlgmr.msra.gmra.mxu0 %v426_v10  ;;  %888 = vmatmul.mubr.bf16.vlgmr.msra.gmra.mxu1 %v428_v11  ;;  %p1681_p10 = pnand %p1680_p9, %p1674_p6 }
 0x126   :  { %1361 = vmatpush3.bf16.msra.mxu0 %v1570_v9  ;;  %1392 = vmatpush3.bf16.msra.mxu1 %v1585_v26 }
 0x127   :  { %1362 = vmatprep.subr.bf16.mxu0 %v1571_v12  ;;  %1393 = vmatprep.subr.bf16.mxu1 %v1712_v27 }
 0x128   :  { %1407 = vmatprep.mubr.msk.bf16.mxu1 %vm1713_vm0, %v1712_v27 }
 0x12a   :  { %1363 = vmatpush3.bf16.msra.mxu0 %v1572_v13  ;;  %1394 = vmatpush3.bf16.msra.mxu1 %v1586_v28 }
 0x12b   :  { %1364 = vmatprep.subr.bf16.mxu0 %v1573_v14  ;;  %1395 = vmatprep.subr.bf16.mxu1 %v1712_v27 }
 0x12e   :  { %1365 = vmatpush3.bf16.msra.mxu0 %v1574_v15  ;;  %1396 = vmatpush3.bf16.msra.mxu1 %v1587_v29 }
 0x12f   :  { %1366 = vmatprep.subr.bf16.mxu0 %v1575_v16  ;;  %1397 = vmatprep.subr.bf16.mxu1 %v1712_v27 }
 0x132   :  { %1367 = vmatpush3.bf16.msra.mxu0 %v1576_v17  ;;  %1398 = vmatpush3.bf16.msra.mxu1 %v1588_v30 }
 0x133   :  { %1368 = vmatprep.subr.bf16.mxu0 %v1577_v18  ;;  %1399 = vmatprep.subr.bf16.mxu1 %v1712_v27 }
 0x136   :  { %1369 = vmatpush3.bf16.msra.mxu0 %v1578_v19  ;;  %1400 = vmatpush3.bf16.msra.mxu1 %v1589_v31 }
 0x137   :  { %1370 = vmatprep.subr.bf16.mxu0 %v1579_v20  ;;  %1401 = vmatprep.subr.bf16.mxu1 %v1712_v27 }
 0x13a   :  { %1371 = vmatpush3.bf16.msra.mxu0 %v1580_v21  ;;  %1402 = vmatpush3.bf16.msra.mxu1 %v1590_v37 }
 0x13b   :  { %1372 = vmatprep.subr.bf16.mxu0 %v1581_v22  ;;  %1403 = vmatprep.subr.bf16.mxu1 %v1712_v27 }
 0x13e   :  { %1373 = vmatpush3.bf16.msra.mxu0 %v1582_v23  ;;  %1404 = vmatpush3.bf16.msra.mxu1 %v1591_v58 }
 0x13f   :  { %1374 = vmatprep.subr.bf16.mxu0 %v1583_v24  ;;  %1405 = vmatprep.subr.bf16.mxu1 %v1712_v27 }
 0x142   :  { %1375 = vmatpush3.bf16.msra.mxu0 %v1584_v25  ;;  %1406 = vmatpush3.bf16.msra.mxu1 %v1592_v40 }
 0x1e5   :  { %v848_v35 = vpop.f32.mrf.mxu0  ;;  %v889_v36 = vpop.f32.mrf.mxu1 }
 0x1e6   :  { %v890_v38 = vadd.f32 %v889_v36, %v848_v35 }
 0x1e7   :  { %v850_v42 = vpop.f32.mrf.mxu0  ;;  %v891_v43 = vpop.f32.mrf.mxu1 }
 0x1e8   :  { %v907_v44 = vmul.f32 %v900_v34, %v890_v38  ;;  %v892_v45 = vadd.f32 %v891_v43, %v850_v42 }
 0x1e9   :  { %v852_v47 = vpop.f32.mrf.mxu0  ;;  %v893_v48 = vpop.f32.mrf.mxu1 }
 0x1ea   :  { %v920_v49 = vadd.f32 %v913_v39, %v907_v44  ;;  %v908_v50 = vmul.f32 %v904_v41, %v892_v45 }
 0x1eb   :  { %v853_v51 = vpop.f32.mrf.mxu0  ;;  %v894_v52 = vpop.f32.mrf.mxu1 }
 0x1ec   :  { %v921_v53 = vadd.f32 %v917_v46, %v908_v50  ;;  %v922_v54 = vmax.f32 %v920_v49, 0.0 }
 0x1ee   :  { %v923_v55 = vmax.f32 %v921_v53, 0.0  ;;  %v924_v57 = vpack.c.bf16 %v922_v54, %v922_v54 }
 0x1f0   :  { %v925_v56 = vpack.c.bf16 %v923_v55, %v923_v55 }
 0x1f2   :  { %1086 = vmatprep.mubr.bf16.mxu0 %v925_v56 }
 0x1f3   :  { %1087 = vmatmul.mubr.bf16.vlgmr.msra.gmra.mxu0 %v924_v57 }
 0x2b3   :  { %v1376_v59 = vpop.f32.mrf.mxu0 }
 0x2b5   :  { %v1377_v61 = vpop.f32.mrf.mxu0 }
 0x2b6   :  { %v1378_v62 = vadd.f32 %v1377_v61, %v1376_v59 }
 0x2b7   :  { %v1379_v0 = vpop.f32.mrf.mxu0 }
 0x2b8   :  { %v1098_v1 = vmul.f32 %v1378_v62, %v1349_v60 }
 0x2b9   :  { %v1380_v2 = vpop.f32.mrf.mxu0 }
 0x2ba   :  { %v1103_v3 = vadd.f32 %v1350_v63, %v1098_v1 }
 0x2bc   :  { %v1104_v4 = vmax.f32 %v1103_v3, 0.0 }
 0x2be   :  { %v1105_v5 = vpack.c.bf16 %v1104_v4, %v1104_v4 }
 0x2c0   :  { %1408 = vmatmul.mubr.bf16.vlgmr.msra.gmra.mxu1 %v1105_v5 }
 0x380   :  { %v1211_v7 = vpop.f32.mrf.mxu1 }
 0x381   :  { %v1212_v8 = vadd.f32 %v1351_v6, %v1211_v7 }
 0x382   :  { %v1409_v9 = vpop.f32.mrf.mxu1 }
 0x383   :  { %1217 = vst [vmem:[#allocation10] sm:$0xff] %v1212_v8 }
 0x384   :  { %v1214_v10 = vpop.f32.mrf.mxu1 }
 0x385   :  { %1684 = shalt.err (!%p1681_p10)
}
 0x386   :  { %1227 = dma.vmem_to_hbm [thread:$0]  %s1225_s24, 128, %s1825_s9, [#allocation4]   ;;  %v1410_v11 = vpop.f32.mrf.mxu1 }
 0x387   :  { %1699 = dma.done.wait [#allocation4], 128  }
 0x388   :  { %1700 = vsyncadd [#allocation4], 4294967168 }
 0x389   :  { %1231 = vsyncpa [#allocation3], 1 }
 0x38a   :  { %1232 = vsyncpa [#allocation6], 1 }
 0x38b   :  { %1233 = vsyncpa [#allocation9], 1 }
 0x38c   :  { %1234 = vsyncpa [#allocation4], 1 }

</bundles_post_ra>
